<compile_context>
chip_gen: v7x
topology: tpu7x:2x2x1
jax: 0.10.0
libtpu: 0.0.40
codegen_flags: <defaults>
</compile_context>

<pallas_src>
import functools

import jax
import jax.numpy as jnp
from jax import lax
from jax.experimental import pallas as pl
from jax.experimental.pallas import tpu as pltpu


def _round_up(a: int, m: int) -> int:
    return ((a + m - 1) // m) * m


def mlp_kernel(x_ref, w1_ref, b1_ref, w2_ref, b2_ref, o_ref, *, approx_sigmoid):
    # x tile arrives in natural (TB, F) layout; contract on its last dim so
    # the result is (H, TB) with batch riding the 128-lane axis (no wrapper
    # transpose, no lane-sparse intermediates).
    xv = x_ref[...].astype(jnp.float32)
    h = lax.dot_general(
        w1_ref[...], xv,
        dimension_numbers=(((1,), (1,)), ((), ())),      # W1 @ x^T
        preferred_element_type=jnp.float32,
    )                                                    # (H, TB)
    h = jnp.maximum(h + b1_ref[...], 0.0)                # bias (H,1) + ReLU

    # fc2 (out_features == 1) as an M=1 MXU matmul: (1, H) @ (H, TB) -> (1, TB).
    z = jnp.dot(w2_ref[...], h, preferred_element_type=jnp.float32)
    z = z + b2_ref[0, 0]                                 # scalar bias from SMEM

    # sigmoid(z) = 1 / (1 + exp(-z)); exp and (approx) reciprocal ride the EUP.
    p = pl.reciprocal(1.0 + jnp.exp(-z), approx=approx_sigmoid)
    o_ref[...] = p.astype(o_ref.dtype)                   # lane-dense (1, TB) store


def net_forward(x, w1, b1, w2, b2, *, tile_b=None, approx_sigmoid=False):
    """Forward pass of Net.

    x : (B, F)            -- batch of feature rows (natural layout, no copy)
    w1: (H, F) float32    -- fc1.weight (PyTorch (out, in) layout)
    b1: (H,)   float32    -- fc1.bias
    w2: (1, H) float32    -- fc2.weight
    b2: (1,)   float32    -- fc2.bias
    returns (B, 1) float32 survival probabilities.
    """
    B, F = x.shape
    H = w1.shape[0]

    if tile_b is None:
        target = 8192                                   # 4k-16k amortizes per-step overhead
        # keep >= 2 grid steps so megacore (v7x) can shard the batch axis
        tile_b = min(target, max(128, _round_up(pl.cdiv(B, 2), 128)))
        if B <= tile_b and B % 8 == 0:
            tile_b = B                                  # tiny batch: exact single block

    grid = (pl.cdiv(B, tile_b),)

    w1c = jnp.asarray(w1, jnp.float32).reshape(H, F)
    b1c = jnp.asarray(b1, jnp.float32).reshape(H, 1)
    w2c = jnp.asarray(w2, jnp.float32).reshape(1, H)
    b2c = jnp.asarray(b2, jnp.float32).reshape(1, 1)

    kernel = functools.partial(mlp_kernel, approx_sigmoid=approx_sigmoid)

    out = pl.pallas_call(
        kernel,
        out_shape=jax.ShapeDtypeStruct((1, B), jnp.float32),
        grid=grid,
        in_specs=[
            # streamed batch tiles of x in natural (B, F) layout: the HBM read
            # is contiguous (tile_b * F * 4 bytes per step).
            pl.BlockSpec((tile_b, F), lambda i: (i, 0)),
            # weights / biases: constant index_map -> single DMA, VMEM-resident
            pl.BlockSpec((H, F), lambda i: (0, 0)),
            pl.BlockSpec((H, 1), lambda i: (0, 0)),
            pl.BlockSpec((1, H), lambda i: (0, 0)),
            # scalar fc2 bias lives in SMEM
            pl.BlockSpec(memory_space=pltpu.MemorySpace.SMEM),
        ],
        # lane-dense output: (1, TB) row with batch on the 128-lane axis
        out_specs=pl.BlockSpec((1, tile_b), lambda i: (0, i)),
        compiler_params=pltpu.CompilerParams(
            dimension_semantics=("parallel",),          # second TC on v7x
            vmem_limit_bytes=32 * 1024 * 1024,          # headroom for 8k batch tiles
        ),
    )(x, w1c, b1c, w2c, b2c)

    # (1, B) -> PyTorch (B, 1) layout (pure reshape, element order unchanged)
    return out.reshape(B, 1)


def reference_forward(x, w1, b1, w2, b2):
    h = jnp.maximum(x @ w1.T + b1, 0.0)
    return jax.nn.sigmoid(h @ w2.T + b2)


if __name__ == "__main__":
    # Small shapes consistent with the module: Titanic-style feature vector.
    batch = 8
    in_features = 8          # X_train.shape[1]
    hidden = 32              # hidden_layer_size

    key = jax.random.PRNGKey(0)
    kx, kw1, kb1, kw2, kb2, kx2 = jax.random.split(key, 6)

    x = jax.random.normal(kx, (batch, in_features), dtype=jnp.float32)

    # Deterministic synthetic params in PyTorch nn.Linear layout.
    bound1 = 1.0 / (in_features ** 0.5)
    w1 = jax.random.uniform(kw1, (hidden, in_features), jnp.float32, -bound1, bound1)
    b1 = jax.random.uniform(kb1, (hidden,), jnp.float32, -bound1, bound1)
    bound2 = 1.0 / (hidden ** 0.5)
    w2 = jax.random.uniform(kw2, (1, hidden), jnp.float32, -bound2, bound2)
    b2 = jax.random.uniform(kb2, (1,), jnp.float32, -bound2, bound2)

    out = net_forward(x, w1, b1, w2, b2)
    out = jax.block_until_ready(out)
    ref = reference_forward(x, w1, b1, w2, b2)
    assert out.shape == (batch, 1)
    assert jnp.allclose(out, ref, atol=1e-5, rtol=1e-5)

    # Extra sanity check: multi-step grid with a ragged last batch block
    # (exercises the streamed x tiles + masked output writeback path).
    batch2 = 300
    x2 = jax.random.normal(kx2, (batch2, in_features), dtype=jnp.float32)
    out2 = jax.block_until_ready(net_forward(x2, w1, b1, w2, b2))
    ref2 = reference_forward(x2, w1, b1, w2, b2)
    assert out2.shape == (batch2, 1)
    assert jnp.allclose(out2, ref2, atol=1e-5, rtol=1e-5)

    print("KERNEL_OK")
</pallas_src>

<mosaic_0001>
module attributes {stable_mosaic.version = 11 : i64} {
  func.func @mlp_kernel(%arg0: i32, %arg1: memref<8x8xf32, #tpu.memory_space<vmem>>, %arg2: memref<32x8xf32, #tpu.memory_space<vmem>>, %arg3: memref<32x1xf32, #tpu.memory_space<vmem>>, %arg4: memref<1x32xf32, #tpu.memory_space<vmem>>, %arg5: memref<1x1xf32, #tpu.memory_space<smem>>, %arg6: memref<1x8xf32, #tpu.memory_space<vmem>>) attributes {dimension_semantics = [#tpu.dimension_semantics<parallel>], iteration_bounds = array<i64: 1>, scalar_prefetch = 0 : i64, scratch_operands = 0 : i64, tpu.core_type = #tpu.core_type<tc>, window_params = [{transform_indices = @transform_0, window_bounds = array<i64: 8, 8>}, {pipeline_mode = #tpu.pipeline_mode<synchronous>, transform_indices = @transform_1, window_bounds = array<i64: 32, 8>}, {pipeline_mode = #tpu.pipeline_mode<synchronous>, transform_indices = @transform_2, window_bounds = array<i64: 32, 1>}, {pipeline_mode = #tpu.pipeline_mode<synchronous>, transform_indices = @transform_3, window_bounds = array<i64: 1, 32>}, {transform_indices = @transform_4, window_bounds = array<i64: 1, 1>}, {transform_indices = @transform_5, window_bounds = array<i64: 1, 8>}]} {
    %c0 = arith.constant 0 : index
    %c0_0 = arith.constant 0 : index
    %0 = vector.load %arg1[%c0, %c0_0] : memref<8x8xf32, #tpu.memory_space<vmem>>, vector<8x8xf32>
    %c0_1 = arith.constant 0 : index
    %c0_2 = arith.constant 0 : index
    %1 = vector.load %arg2[%c0_1, %c0_2] : memref<32x8xf32, #tpu.memory_space<vmem>>, vector<32x8xf32>
    %cst = arith.constant dense<0.000000e+00> : vector<32x8xf32>
    %2 = tpu.matmul %1, %0, %cst {dimension_numbers = #tpu.dot_dimension_numbers<[1], [1], [0], [0], [0, 0, 1, 0], [], []>} : vector<32x8xf32>, vector<8x8xf32>, vector<32x8xf32> -> vector<32x8xf32>
    %c0_3 = arith.constant 0 : index
    %c0_4 = arith.constant 0 : index
    %3 = vector.load %arg3[%c0_3, %c0_4] : memref<32x1xf32, #tpu.memory_space<vmem>>, vector<32x1xf32>
    %4 = vector.broadcast %3 : vector<32x1xf32> to vector<32x8xf32>
    %5 = arith.addf %2, %4 : vector<32x8xf32>
    %cst_5 = arith.constant 0.000000e+00 : f32
    %6 = vector.broadcast %cst_5 : f32 to vector<32x8xf32>
    %7 = arith.maximumf %5, %6 : vector<32x8xf32>
    %c0_6 = arith.constant 0 : index
    %c0_7 = arith.constant 0 : index
    %8 = vector.load %arg4[%c0_6, %c0_7] : memref<1x32xf32, #tpu.memory_space<vmem>>, vector<1x32xf32>
    %cst_8 = arith.constant dense<0.000000e+00> : vector<1x8xf32>
    %9 = tpu.matmul %8, %7, %cst_8 {dimension_numbers = #tpu.dot_dimension_numbers<[1], [0], [0], [1], [0, 0, 1, 1], [], []>} : vector<1x32xf32>, vector<32x8xf32>, vector<1x8xf32> -> vector<1x8xf32>
    %c0_9 = arith.constant 0 : index
    %c0_10 = arith.constant 0 : index
    %10 = memref.load %arg5[%c0_9, %c0_10] : memref<1x1xf32, #tpu.memory_space<smem>>
    %11 = vector.broadcast %10 : f32 to vector<1x8xf32>
    %12 = arith.addf %9, %11 : vector<1x8xf32>
    %cst_11 = arith.constant 0.000000e+00 : f32
    %13 = vector.broadcast %cst_11 : f32 to vector<1x8xf32>
    %14 = arith.subf %13, %12 : vector<1x8xf32>
    %15 = math.exp %14 : vector<1x8xf32>
    %cst_12 = arith.constant 1.000000e+00 : f32
    %16 = vector.broadcast %cst_12 : f32 to vector<1x8xf32>
    %17 = arith.addf %16, %15 : vector<1x8xf32>
    %18 = tpu.reciprocal %17 : vector<1x8xf32> -> vector<1x8xf32>
    %c0_13 = arith.constant 0 : index
    %c0_14 = arith.constant 0 : index
    %19 = vector.load %arg6[%c0_13, %c0_14] : memref<1x8xf32, #tpu.memory_space<vmem>>, vector<1x8xf32>
    tpu.vector_store %arg6[%c0_13, %c0_14], %18 {strides = array<i32>} : memref<1x8xf32, #tpu.memory_space<vmem>>, vector<1x8xf32>,
    return
  }
  func.func @transform_0(%arg0: i32) -> (i32, i32) {
    %c0_i32 = arith.constant 0 : i32
    %c0_i32_0 = arith.constant 0 : i32
    return %arg0, %c0_i32 : i32, i32
  }
  func.func @transform_1(%arg0: i32) -> (i32, i32) {
    %c0_i32 = arith.constant 0 : i32
    %c0_i32_0 = arith.constant 0 : i32
    %c0_i32_1 = arith.constant 0 : i32
    return %c0_i32, %c0_i32_0 : i32, i32
  }
  func.func @transform_2(%arg0: i32) -> (i32, i32) {
    %c0_i32 = arith.constant 0 : i32
    %c0_i32_0 = arith.constant 0 : i32
    %c0_i32_1 = arith.constant 0 : i32
    return %c0_i32, %c0_i32_0 : i32, i32
  }
  func.func @transform_3(%arg0: i32) -> (i32, i32) {
    %c0_i32 = arith.constant 0 : i32
    %c0_i32_0 = arith.constant 0 : i32
    %c0_i32_1 = arith.constant 0 : i32
    return %c0_i32, %c0_i32_0 : i32, i32
  }
  func.func @transform_4(%arg0: i32) -> (i32, i32) {
    %c0_i32 = arith.constant 0 : i32
    %c0_i32_0 = arith.constant 0 : i32
    %c0_i32_1 = arith.constant 0 : i32
    return %c0_i32, %c0_i32_0 : i32, i32
  }
  func.func @transform_5(%arg0: i32) -> (i32, i32) {
    %c0_i32 = arith.constant 0 : i32
    %c0_i32_0 = arith.constant 0 : i32
    return %c0_i32, %arg0 : i32, i32
  }
}

</mosaic_0001>

<bundles_post_ra>
// kernel: tpu_custom_call.1
= control target key start
LH: loop header
LB: loop body
LE: loop exit
PB: predicated region body
PF: predicated region fallthrough
CT: control target
= control target key end

     0   :  { %vm51_vm0 = vcmask 64512   ;;  %v330_v4 = vmov 0   ;;  %s416_s0 = inlined_call_operand.vmem [shape: f32[8,8], index: 0, kind: input, shape index: {}]   ;;  %s417_s1 = inlined_call_operand.vmem [shape: f32[32,8], index: 1, kind: input, shape index: {}]   ;;  %s418_s2 = inlined_call_operand.vmem [shape: f32[32,1], index: 2, kind: input, shape index: {}]   ;;  %s419_s3 = inlined_call_operand.vmem [shape: f32[1,32], index: 3, kind: input, shape index: {}]   ;;  %s420_s4 = inlined_call_operand.<no memory space> [shape: f32[1,1], index: 4, kind: input, shape index: {}]   ;;  %s421_s5 = inlined_call_operand.hbm [shape: f32[1,8], index: 5, kind: output, shape index: {}]  }
   0x1   :  { %v22_v0 = vld [vmem:[%s416_s0] sm:$0xff]  ;;  %v24_v3 = vld [vmem:[%s417_s1 + $0x8] sm:$0xff]  ;;  %300 = vset.pattern.permute.xlu0 %v330_v4  ;;  %v29_v5 = vld [vmem:[%s418_s2 + $0x10] sm:$0xff]  ;;  %301 = vset.pattern.permute.xlu1 %v330_v4 }
   0x2   :  { %v23_v1 = vld [vmem:[%s417_s1] sm:$0xff]  ;;  %270 = vmatprep.subr.msk.mxu0 %vm51_vm0, %v22_v0  ;;  %v25_v6 = vld [vmem:[%s417_s1 + $0x10] sm:$0xff] }
   0x3   :  { %272 = vmatprep.mubr.msk.f32.mxu0 %vm51_vm0, %v23_v1  ;;  %v27_v2 = vld [vmem:[%s418_s2] sm:$0xff]  ;;  %271 = vmatpush3.xpose.msk.msra.mxu0 %vm51_vm0, %v22_v0 }
   0x4   :  { %33 = vperm.xlu0 %300, %v27_v2  }
   0x5   :  { %11 = vsyncpa [#allocation4], 0  ;;  %43 = vperm.xlu1 %301, %v29_v5   ;;  %v28_v7 = vld [vmem:[%s418_s2 + $0x8] sm:$0xff]  ;;  %v30_v8 = vld [vmem:[%s418_s2 + $0x18] sm:$0xff]  ;;  %v331_v10 = vmov 0.0|0.0   ;;  %vm332_vm1 = vmmov 0   ;;  %v158_v31 = vstv %s420_s4 }
   0x6   :  { %273 = vmatmul.mubr.msk.f32.vlgmr.msra.gmra.mrb[0].mxu0 %vm51_vm0, %v24_v3  ;;  %v26_v9 = vld [vmem:[%s417_s1 + $0x18] sm:$0xff]  ;;  %289 = vmatprep.subr.bf16.mxu1 %v331_v10  ;;  %v333_v11 = vmov 0.0   ;;  %v156_v30 = vld [vmem:[%s419_s3] sm:$0x1]  ;;  %vm159_vm2 = vcmask 261120   ;;  %s334_s12 = smov [#allocation3]  }
   0x7   :  { %275 = vmatprep.mubr.msk.f32.mxu0 %vm51_vm0, %v25_v6  ;;  %286 = vmatprep.mubr.msk.f32.mxu1 %vm332_vm1, %v333_v11  ;;  %s246_s13 = sshll.u32 %s334_s12, 4  ;;  %vm238_vm3 = vcmask 57344   ;;  %s247_s13 = int_to_ptr.vmem [resolvable:$true] %s246_s13 }
   0x8   :  { %38 = vperm.xlu0 %300, %v28_v7   ;;  %s306_s3 = scalar_lea.vmem %s247_s13, 16  ;;  %s310_s14 = scalar_lea.vmem %s247_s13, 32 }
   0x9   :  { %48 = vperm.xlu1 %301, %v30_v8   ;;  %p307_p0 = scmp.ne.s32.totalorder %s247_s13, %s306_s3  ;;  %p311_p1 = scmp.lt.s32.totalorder %s247_s13, %s247_s13 }
   0xa   :  { %276 = vmatmul.mubr.msk.f32.gmra.mrb[2].mxu0 %vm51_vm0, %v26_v9  ;;  %p312_p2 = scmp.lt.s32.totalorder %s310_s14, %s306_s3 }
   0xc   :  { %p313_p3 = por %p312_p2, %p311_p1 }
   0xe   :  { %p314_p4 = pnand %p313_p3, %p307_p0 }
  0x83   :  { %v34_v12 = vpop.permute.xlu0 %33 }
  0x84   :  { %v44_v13 = vpop.permute.xlu1 %43 }
  0x87   :  { %v39_v14 = vpop.permute.xlu0 %38 }
  0x88   :  { %v49_v20 = vpop.permute.xlu1 %48 }
  0xd9   :  { %v274_v15 = vpop.f32.mrb[0].mxu0 }
  0xda   :  { %v139_v16 = vadd.f32 %v274_v15, %v39_v14  ;;  %v133_v17 = vpop.f32.mrb[1].mxu0 }
  0xdb   :  { %v134_v18 = vadd.f32 %v133_v17, %v34_v12 }
  0xdc   :  { %v153_v19 = vmax.f32 %v139_v16, 0.0 }
  0xdd   :  { %v152_v21 = vmax.f32 %v134_v18, 0.0  ;;  %v277_v22 = vpop.f32.mrb[2].mxu0 }
  0xde   :  { %v149_v23 = vadd.f32 %v277_v22, %v49_v20  ;;  %v143_v24 = vpop.f32.mrb[3].mxu0 }
  0xdf   :  { %v144_v25 = vadd.f32 %v143_v24, %v44_v13  ;;  %v290_v26 = vpack.c.bf16 %v153_v19, %v152_v21 }
  0xe0   :  { %v155_v27 = vmax.f32 %v149_v23, 0.0 }
  0xe1   :  { %v154_v28 = vmax.f32 %v144_v25, 0.0  ;;  %291 = vmatpush3.bf16.msra.mxu1 %v290_v26 }
  0xe2   :  { %292 = vmatprep.subr.bf16.mxu1 %v331_v10 }
  0xe3   :  { %v293_v29 = vpack.c.bf16 %v155_v27, %v154_v28 }
  0xe5   :  { %294 = vmatpush3.bf16.msra.mxu1 %v293_v29 }
  0xe8   :  { %287 = vmatmul.mubr.msk.f32.vlgmr.msra.gmra.mrb[0].mxu1 %vm159_vm2, %v156_v30 }
 0x1bb   :  { %v229_v32 = vpop.f32.mrb[0].mxu1 }
 0x1bc   :  { %v230_v33 = vadd.f32 %v229_v32, %v158_v31  ;;  %v288_v34 = vpop.f32.mrb[1].mxu1 }
 0x1be   :  { %v233_v35 = vsub.f32 0.0, %v230_v33 }
 0x1c0   :  { %v234_v36 = vmul.f32 1.442695, %v233_v35 }
 0x1c2   :  { %302 = vpow2.f32 %v234_v36 }
 0x1cc   :  { %v303_v37 = vpop.eup %302 }
 0x1cd   :  { %v236_v38 = vadd.f32 1.0, %v303_v37 }
 0x1cf   :  { %304 = vrcp.f32 %v236_v38 }
 0x1d9   :  { %v305_v39 = vpop.eup %304 }
 0x1da   :  { %239 = vst.msk [vmem:[#allocation3] sm:$0x1] %vm238_vm3, %v305_v39 }
 0x1db   :  { %317 = shalt.err (!%p314_p4)
}
 0x1dc   :  { %s318_s16 = scalar_lea.hbm %s421_s5, 16 }
 0x1dd   :  { %p319_p5 = scmp.ne.s32.totalorder %s421_s5, %s318_s16  ;;  %p322_p6 = scmp.lt.u32.totalorder %s318_s16, %s421_s5 }
 0x1df   :  { %p324_p7 = pnand %p322_p6, %p319_p5 }
 0x1e1   :  { %327 = shalt.err (!%p324_p7)
}
 0x1e2   :  { %249 = dma.vmem_to_hbm [thread:$0]  %s247_s13, 16, %s421_s5, [#allocation4]  }
 0x1e3   :  { %328 = dma.done.wait [#allocation4], 16  }
 0x1e4   :  { %329 = vsyncadd [#allocation4], 4294967280 }
 0x1e5   :  { %253 = vsyncpa [#allocation4], 1 }

</bundles_post_ra>
